<compile_context>
chip_gen: v7x
topology: tpu7x:2x2x1
jax: 0.10.0
libtpu: 0.0.40
codegen_flags: <defaults>
</compile_context>

<pallas_src>
import jax
import jax.numpy as jnp
from jax.experimental import pallas as pl
from jax.experimental.pallas import tpu as pltpu


def _norm_fc_kernel(x_ref, w_ref, b_ref, o_ref):
    # x_ref: (1, TM, H) f32    w_ref: (1, H, OUT) bf16
    # b_ref: (1, 1, OUT) f32   o_ref: (1, TM, OUT) out_dtype (bf16 default)
    x = x_ref[0]                                              # f32 (TM, H)

    # F.normalize(x, dim=-1): x / max(||x||_2, 1e-12) == x * rsqrt(max(ss,1e-24))
    sum_sq = jnp.sum(x * x, axis=-1, keepdims=True)           # f32 (TM, 1)
    inv_norm = jax.lax.rsqrt(jnp.maximum(sum_sq, 1e-24))      # EUP slot

    # Feed the raw bf16 x tile straight to the MXU; the per-row norm scale
    # commutes with the matmul and is applied to the (TM, OUT) result in f32.
    y = jnp.dot(x.astype(jnp.bfloat16), w_ref[0],
                preferred_element_type=jnp.float32)           # f32 (TM, OUT)

    o_ref[0] = (y * inv_norm + b_ref[0]).astype(o_ref.dtype)


def _round_up(x, m):
    return ((x + m - 1) // m) * m


def encoder_image_precomp_heads(hidden_states, weights, biases,
                                *, tm=256, out_dtype=jnp.bfloat16):
    """Fused L2-normalize + Linear for all 6 branches.

    hidden_states: (6, M, H)   f32 -- 6 ViT hidden states, tokens flattened to M
    weights:       (6, H, OUT)     -- PyTorch weight.T, kernel computes x @ W
    biases:        (6, 1, OUT)
    returns:       (6, M, OUT) in out_dtype (default bfloat16)
    """
    n_branch, M, H = hidden_states.shape
    OUT = weights.shape[-1]

    # Token-axis tile: multiple of 16 (bf16 sublane packing), capped near M.
    tm = min(tm, _round_up(M, 16))
    tm = max(16, (tm // 16) * 16)
    m_tiles = pl.cdiv(M, tm)          # ragged final block handled by Pallas

    # Weights as bf16 MXU operands (tiny one-time convert; in practice store
    # the weights in bf16).  Bias stays f32.  x stays f32 (cast in-kernel).
    w_bf16 = weights.astype(jnp.bfloat16)
    b_f32 = biases.astype(jnp.float32)
    x_f32 = hidden_states.astype(jnp.float32)

    out_itemsize = jnp.dtype(out_dtype).itemsize
    cost = pl.CostEstimate(
        flops=2 * n_branch * M * H * OUT,
        transcendentals=n_branch * M,                      # rsqrt per row
        bytes_accessed=(n_branch * M * H * 4               # x (f32 in)
                        + n_branch * H * OUT * 2           # W (bf16)
                        + n_branch * OUT * 4               # bias
                        + n_branch * M * OUT * out_itemsize),
    )

    out = pl.pallas_call(
        _norm_fc_kernel,
        out_shape=jax.ShapeDtypeStruct((n_branch, M, OUT), out_dtype),
        grid_spec=pltpu.PrefetchScalarGridSpec(
            num_scalar_prefetch=0,
            # branch OUTER, m INNER: weight/bias blocks stay VMEM-resident
            # across all m-tiles of a branch.
            grid=(n_branch, m_tiles),
            in_specs=[
                pl.BlockSpec((1, tm, H), lambda b, m: (b, m, 0)),
                pl.BlockSpec((1, H, OUT), lambda b, m: (b, 0, 0)),
                pl.BlockSpec((1, 1, OUT), lambda b, m: (b, 0, 0)),
            ],
            out_specs=pl.BlockSpec((1, tm, OUT), lambda b, m: (b, m, 0)),
        ),
        compiler_params=pltpu.CompilerParams(
            # Megacore split on the branch axis only (3/3 on v7x), keeping
            # per-core weight residency; "arbitrary" m is free on v5e/v6e.
            dimension_semantics=("parallel", "arbitrary"),
            vmem_limit_bytes=32 << 20,
        ),
        cost_estimate=cost,
    )(x_f32, w_bf16, b_f32)

    return out


def init_fc_params(key, hidden, out_dim, n_branch=6):
    """Matches the module's init_weights(): weight ~ U(-r, r),
    r = sqrt(6)/sqrt(in+out), bias = 0.  Stored as (H, OUT) = weight.T."""
    r = (6.0 ** 0.5) / ((hidden + out_dim) ** 0.5)
    keys = jax.random.split(key, n_branch)
    ws = jnp.stack([
        jax.random.uniform(k, (hidden, out_dim), jnp.float32, minval=-r, maxval=r)
        for k in keys
    ])
    bs = jnp.zeros((n_branch, 1, out_dim), jnp.float32)
    return ws, bs


if __name__ == "__main__":
    # Small shapes consistent with the forward semantics:
    # batch=2, seq(tokens)=8, hidden=128 (stands in for ViT's 768),
    # out_dim=256 (stands in for 1024). Six hidden-state branches.
    B, S, H, OUT, N_BRANCH = 2, 8, 128, 256, 6
    M = B * S

    key = jax.random.PRNGKey(0)
    k_hidden, k_w = jax.random.split(key)

    # Synthetic ViT hidden states: (6, B, S, H) -> flatten tokens to (6, M, H).
    hidden_states = jax.random.normal(k_hidden, (N_BRANCH, B, S, H), jnp.float32)
    hidden_flat = hidden_states.reshape(N_BRANCH, M, H)

    weights, biases = init_fc_params(k_w, H, OUT, N_BRANCH)

    feats = encoder_image_precomp_heads(hidden_flat, weights, biases)
    feats = jax.block_until_ready(feats)
    assert feats.shape == (N_BRANCH, M, OUT)

    # Reference in plain JAX mirroring the kernel math: norm from f32 x,
    # bf16 matmul operands, f32 accumulation, scale-after-matmul, bf16 output.
    x32 = hidden_flat
    sum_sq = jnp.sum(x32 * x32, axis=-1, keepdims=True)
    inv_norm = jax.lax.rsqrt(jnp.maximum(sum_sq, 1e-24))
    x_b = x32.astype(jnp.bfloat16).astype(jnp.float32)
    w_b = weights.astype(jnp.bfloat16).astype(jnp.float32)
    ref = jnp.einsum("bmh,bho->bmo", x_b, w_b) * inv_norm + biases
    ref_q = ref.astype(jnp.bfloat16).astype(jnp.float32)
    assert jnp.allclose(feats.astype(jnp.float32), ref_q, atol=5e-3, rtol=5e-3)

    # Reshape to per-branch (B, S, OUT) tuple like the PyTorch forward.
    features = tuple(feats[i].reshape(B, S, OUT) for i in range(N_BRANCH))
    jax.block_until_ready(features)

    print("KERNEL_OK")
</pallas_src>

<mosaic_0001>
module attributes {stable_mosaic.version = 11 : i64} {
  func.func @_norm_fc_kernel(%arg0: i32, %arg1: i32, %arg2: memref<1x16x128xf32, #tpu.memory_space<vmem>>, %arg3: memref<1x128x256xbf16, #tpu.memory_space<vmem>>, %arg4: memref<1x1x256xf32, #tpu.memory_space<vmem>>, %arg5: memref<1x16x256xbf16, #tpu.memory_space<vmem>>) attributes {dimension_semantics = [#tpu.dimension_semantics<parallel>, #tpu.dimension_semantics<arbitrary>], iteration_bounds = array<i64: 6, 1>, scalar_prefetch = 0 : i64, scratch_operands = 0 : i64, tpu.core_type = #tpu.core_type<tc>, window_params = [{transform_indices = @transform_0, window_bounds = array<i64: 1, 16, 128>}, {transform_indices = @transform_1, window_bounds = array<i64: 1, 128, 256>}, {transform_indices = @transform_2, window_bounds = array<i64: 1, 1, 256>}, {transform_indices = @transform_3, window_bounds = array<i64: 1, 16, 256>}]} {
    %c0 = arith.constant 0 : index
    %c0_0 = arith.constant 0 : index
    %c0_1 = arith.constant 0 : index
    %0 = vector.load %arg2[%c0, %c0_0, %c0_1] : memref<1x16x128xf32, #tpu.memory_space<vmem>>, vector<1x16x128xf32>
    %1 = vector.shape_cast %0 : vector<1x16x128xf32> to vector<16x128xf32>
    %2 = arith.mulf %1, %1 : vector<16x128xf32>
    %cst = arith.constant dense<0.000000e+00> : vector<16xf32>
    %3 = vector.multi_reduction <add>, %2, %cst [1] : vector<16x128xf32> to vector<16xf32>
    %4 = vector.shape_cast %3 : vector<16xf32> to vector<16x1xf32>
    %cst_2 = arith.constant 1.000000e-24 : f32
    %5 = vector.broadcast %cst_2 : f32 to vector<16x1xf32>
    %6 = arith.maximumf %4, %5 : vector<16x1xf32>
    %7 = math.rsqrt %6 : vector<16x1xf32>
    %8 = arith.truncf %1 : vector<16x128xf32> to vector<16x128xbf16>
    %c0_3 = arith.constant 0 : index
    %c0_4 = arith.constant 0 : index
    %c0_5 = arith.constant 0 : index
    %9 = vector.load %arg3[%c0_3, %c0_4, %c0_5] : memref<1x128x256xbf16, #tpu.memory_space<vmem>>, vector<1x128x256xbf16>
    %10 = vector.shape_cast %9 : vector<1x128x256xbf16> to vector<128x256xbf16>
    %cst_6 = arith.constant dense<0.000000e+00> : vector<16x256xf32>
    %11 = tpu.matmul %8, %10, %cst_6 {dimension_numbers = #tpu.dot_dimension_numbers<[1], [0], [0], [1], [0, 0, 1, 1], [], []>} : vector<16x128xbf16>, vector<128x256xbf16>, vector<16x256xf32> -> vector<16x256xf32>
    %12 = vector.broadcast %7 : vector<16x1xf32> to vector<16x256xf32>
    %13 = arith.mulf %11, %12 : vector<16x256xf32>
    %c0_7 = arith.constant 0 : index
    %c0_8 = arith.constant 0 : index
    %c0_9 = arith.constant 0 : index
    %14 = vector.load %arg4[%c0_7, %c0_8, %c0_9] : memref<1x1x256xf32, #tpu.memory_space<vmem>>, vector<1x1x256xf32>
    %15 = vector.shape_cast %14 : vector<1x1x256xf32> to vector<1x256xf32>
    %16 = vector.broadcast %15 : vector<1x256xf32> to vector<16x256xf32>
    %17 = arith.addf %13, %16 : vector<16x256xf32>
    %18 = arith.truncf %17 : vector<16x256xf32> to vector<16x256xbf16>
    %c0_10 = arith.constant 0 : index
    %c0_11 = arith.constant 0 : index
    %c0_12 = arith.constant 0 : index
    %19 = vector.load %arg5[%c0_10, %c0_11, %c0_12] : memref<1x16x256xbf16, #tpu.memory_space<vmem>>, vector<1x16x256xbf16>
    %20 = vector.shape_cast %19 : vector<1x16x256xbf16> to vector<16x256xbf16>
    %21 = vector.shape_cast %18 : vector<16x256xbf16> to vector<1x16x256xbf16>
    tpu.vector_store %arg5[%c0_10, %c0_11, %c0_12], %21 {strides = array<i32>} : memref<1x16x256xbf16, #tpu.memory_space<vmem>>, vector<1x16x256xbf16>,
    return
  }
  func.func @transform_0(%arg0: i32, %arg1: i32) -> (i32, i32, i32) {
    %c0_i32 = arith.constant 0 : i32
    %c0_i32_0 = arith.constant 0 : i32
    return %arg0, %arg1, %c0_i32 : i32, i32, i32
  }
  func.func @transform_1(%arg0: i32, %arg1: i32) -> (i32, i32, i32) {
    %c0_i32 = arith.constant 0 : i32
    %c0_i32_0 = arith.constant 0 : i32
    %c0_i32_1 = arith.constant 0 : i32
    return %arg0, %c0_i32, %c0_i32_0 : i32, i32, i32
  }
  func.func @transform_2(%arg0: i32, %arg1: i32) -> (i32, i32, i32) {
    %c0_i32 = arith.constant 0 : i32
    %c0_i32_0 = arith.constant 0 : i32
    %c0_i32_1 = arith.constant 0 : i32
    return %arg0, %c0_i32, %c0_i32_0 : i32, i32, i32
  }
  func.func @transform_3(%arg0: i32, %arg1: i32) -> (i32, i32, i32) {
    %c0_i32 = arith.constant 0 : i32
    %c0_i32_0 = arith.constant 0 : i32
    return %arg0, %arg1, %c0_i32 : i32, i32, i32
  }
}

</mosaic_0001>

<bundles_post_ra>
// kernel: tpu_custom_call.1
= control target key start
LH: loop header
LB: loop body
LE: loop exit
PB: predicated region body
PF: predicated region fallthrough
CT: control target
= control target key end

     0   :  { %s1246_s0 = inlined_call_operand.hbm [shape: f32[6,16,128], index: 0, kind: input, shape index: {}]   ;;  %s1247_s1 = inlined_call_operand.hbm [shape: bf16[6,128,256], index: 1, kind: input, shape index: {}]   ;;  %s1248_s2 = inlined_call_operand.hbm [shape: f32[6,1,256], index: 2, kind: input, shape index: {}]   ;;  %s1249_s3 = inlined_call_operand.hbm [shape: bf16[6,16,256], index: 3, kind: output, shape index: {}]  }
   0x1   :  { %1259 = sst [smem:[#allocation17_spill]] %s1246_s0 }
   0x2   :  { %1260 = sst [smem:[#allocation18_spill]] %s1247_s1 }
   0x3   :  { %8 = vsyncpa [#allocation3], 0 }
   0x4   :  { %10 = vsyncpa [#allocation3 + $0x1], 0 }
   0x5   :  { %11 = vsyncpa [#allocation6], 0 }
   0x6   :  { %13 = vsyncpa [#allocation6 + $0x1], 0 }
   0x7   :  { %14 = vsyncpa [#allocation4], 0 }
   0x8   :  { %16 = vsyncpa [#allocation4 + $0x1], 0  ;;  %s977_s12 = smov 0   ;;  %s979_s13 = smov 0  }
   0x9   :  { %s981_s14 = smov 0   ;;  %s983_s15 = smov 0  }
   0xa   :  { %s985_s16 = smov 0   ;;  %s987_s17 = smov 0  }
   0xb LB: > { %1261 = sst [smem:[#allocation12_spill]] %s926_s12  ;;  %s1008_s18 = sadd.s32 4294967295, %s946_s17   ;;  %s946_s17 = sphi %s987_s17, %s22_s17   ;;  %s942_s16 = sphi %s985_s16, %s1289_s16   ;;  %s938_s15 = sphi %s983_s15, %s1288_s15   ;;  %s934_s14 = sphi %s981_s14, %s1284_s14   ;;  %s930_s13 = sphi %s979_s13, %s1287_s13   ;;  %s926_s12 = sphi %s977_s12, %s1286_s12  }
   0xc   : > { %1262 = sst [smem:[#allocation13_spill]] %s934_s14  ;;  %s619_s19 = sadd.s32 4294967294, %s946_s17  }
   0xd   : > { %s34_s20 = sadd.s32 1, %s942_s16  ;;  %s43_s21 = sadd.s32 1, %s934_s14 }
   0xe   : > { %p36_p0 = scmp.ge.s32.totalorder %s34_s20, 6  ;;  %p50_p1 = scmp.ne.s32.totalorder %s934_s14, %s930_s13 }
   0xf   : > { %p51_p2 = scmp.eq.s32.totalorder %s946_s17, 0  ;;  %p56_p3 = scmp.ne.s32.totalorder %s930_s13, %s926_s12 }
  0x10   : > { %s1291_s20 = smov (%p36_p0, %s34_s20), 0  ;;  %p57_p5 = scmp.eq.s32.totalorder %s1008_s18, 0 }
  0x11   : > { %1263 = sst [smem:[#allocation14_spill]] %s1291_s20  ;;  %p52_p4 = por %p51_p2, %p50_p1 }
  0x12   : > { %s38_s22 = ssub.s32 %s942_s16, %s1291_s20  ;;  %p134_p6 = scmp.eq.s32.totalorder %s1008_s18, 5 }
  0x13   : > { %p41_p7 = scmp.eq.s32.totalorder %s38_s22, 0  ;;  %p1024_p8 = por %p57_p5, %p56_p3 }
  0x14   : > { %p1028_p9 = por %p134_p6, %p50_p1  ;;  %p140_p10 = scmp.eq.s32.totalorder %s619_s19, 5 }
  0x15   : > { %s1264_s23 = scalar_select %p1024_p8, 1, 0 }
  0x16   : > { %s1265_s24 = scalar_select %p1028_p9, 1, 0 }
  0x17   : > { %s1033_s25 = scalar_select %p41_p7, %s934_s14, %s43_s21  }
  0x18   : > { %p1035_p11 = por %p140_p10, %p56_p3  ;;  %p687_p12 = scmp.lt.s32.totalorder %s946_s17, 6 }
  0x19   : > { %1266 = sst [smem:[#allocation15_spill]] %s1033_s25  ;;  %s1041_s27 = sand.u32 1, %s934_s14  }
  0x1a   : > { %s1267_s26 = scalar_select %p1035_p11, 1, 0 }
  0x1b   : > { %p1043_p13 = pnand %p687_p12, %p52_p4  ;;  %s183_s29 = sand.u32 1, %s946_s17  }
  0x1c   : > { %1268 = sst [smem:[#allocation16_spill]] %s1267_s26  ;;  %s625_s30 = sshll.u32 %s1041_s27, 7 }
  0x1d   : > { %s1269_s28 = scalar_select %p1043_p13, 1, 0 }
  0x1e   : > { %s660_s4 = sshll.u32 %s942_s16, 11  ;;  %s187_s5 = scalar_lea.vmem [#allocation5], %s625_s30 }
  0x1f   : > { %s194_s6 = sshll.u32 %s187_s5, 4  ;;  %s1270_s1 = sld [smem:[#allocation18_spill]]  ;;  %s1055_s6 = int_to_ptr.vmem [resolvable:$true] %s194_s6 }
  0x20   : > { %s1057_s10 = scalar_lea.sflag [#allocation6], %s183_s29  ;;  %p1063_p1 = pneg %p1043_p13 }
  0x25   : > { %s1053_s9 = scalar_lea.hbm %s1270_s1, %s660_s4  ;;  %s775_s30 = scalar_lea.hbm %s1270_s1, 12288 }
  0x26   : > { %s770_s11 = scalar_lea.hbm %s1053_s9, 2048  ;;  %p776_p4 = scmp.lt.u32.totalorder %s1053_s9, %s1270_s1 }
  0x27   : > { %p771_p0 = scmp.ne.s32.totalorder %s1053_s9, %s770_s11  ;;  %p777_p5 = scmp.lt.u32.totalorder %s775_s30, %s770_s11 }
  0x28   : > { %p779_p7 = scmp.lt.u32.totalorder %s770_s11, %s1053_s9 }
  0x29   : > { %p773_p2 = pnand %p1063_p1, %p771_p0  ;;  %p778_p6 = por %p777_p5, %p776_p4 }
  0x2b   : > { %p774_p3 = pneg %p773_p2  ;;  %p780_p10 = por %p779_p7, %p778_p6 }
  0x2d   : > { %p781_p12 = pnand %p780_p10, %p774_p3 }
  0x2f   : > { %784 = shalt.err (!%p781_p12)
}
  0x30   : > { %s785_s29 = scalar_lea.vmem %s1055_s6, 2048  ;;  %s948_s7 = smov [#allocation5]  }
  0x31   : > { %p786_p0 = scmp.ne.s32.totalorder %s1055_s6, %s785_s29  ;;  %s790_s8 = sshll.u32 %s948_s7, 4  ;;  %s791_s8 = int_to_ptr.vmem [resolvable:$false] %s790_s8 }
  0x32   : > { %s792_s21 = scalar_lea.vmem %s791_s8, 4096  ;;  %p793_p9 = scmp.lt.s32.totalorder %s1055_s6, %s791_s8 }
  0x33   : > { %p788_p2 = pnand %p786_p0, %p1063_p1  ;;  %p794_p8 = scmp.lt.s32.totalorder %s792_s21, %s785_s29 }
  0x35   : > { %p789_p11 = pneg %p788_p2  ;;  %p795_p4 = por %p794_p8, %p793_p9 }
  0x37   : > { %p796_p5 = pnand %p795_p4, %p789_p11 }
  0x39   : > { %799 = shalt.err (!%p796_p5)
}
  0x3a   : > { %s1252_s11 = smov 128   ;;  %s1253_s22 = smov 8  }
  0x3b   : > { %679 = dma.hbm_to_vmem [thread:$0]  (!%p1043_p13), %s1053_s9, 2048, %s1055_s6, %s1057_s10, %s1252_s11, %s1252_s11, %s1253_s22  }
  0x3c   : > { %p631_p8 = scmp.ge.s32.totalorder %s946_s17, 1  ;;  %p221_p9 = scmp.lt.s32.totalorder %s946_s17, 7 }
  0x3d   : > { %s622_s4 = sshll.u32 %s1041_s27, 4  ;;  %s659_s5 = sshll.u32 %s942_s16, 8 }
  0x3e   : > { %p1092_p11 = pnand %p631_p8, %p221_p9  ;;  %s1273_s0 = sld [smem:[#allocation17_spill]] }
  0x3f   : > { %s164_s21 = scalar_lea.vmem [#allocation2], %s622_s4  ;;  %s628_s6 = sshll.u32 %s1041_s27, 1 }
  0x40   : > { %s1272_s30 = scalar_select %p1092_p11, 1, 0 }
  0x41   : > { %s173_s1 = sshll.u32 %s164_s21, 4  ;;  %s161_s9 = scalar_lea.sflag [#allocation3], %s1041_s27  ;;  %s1104_s1 = int_to_ptr.vmem [resolvable:$true] %s173_s1 }
  0x44   : > { %s1101_s8 = scalar_lea.hbm %s1273_s0, %s659_s5  ;;  %s805_s5 = scalar_lea.hbm %s1273_s0, 1536 }
  0x45   : > { %s800_s11 = scalar_lea.hbm %s1101_s8, 256  ;;  %p806_p10 = scmp.lt.u32.totalorder %s1101_s8, %s1273_s0 }
  0x46   : > { %p801_p3 = scmp.ne.s32.totalorder %s1101_s8, %s800_s11  ;;  %p807_p12 = scmp.lt.u32.totalorder %s805_s5, %s800_s11 }
  0x47   : > { %p809_p2 = scmp.lt.u32.totalorder %s800_s11, %s1101_s8 }
  0x48   : > { %p803_p6 = pnand %p801_p3, %p1063_p1  ;;  %p808_p0 = por %p807_p12, %p806_p10 }
  0x4a   : > { %p804_p7 = pneg %p803_p6  ;;  %p810_p4 = por %p809_p2, %p808_p0 }
  0x4c   : > { %p811_p5 = pnand %p810_p4, %p804_p7 }
  0x4e   : > { %814 = shalt.err (!%p811_p5)
}
  0x4f   : > { %s815_s4 = scalar_lea.vmem %s1104_s1, 256  ;;  %s951_s20 = smov [#allocation2]  }
  0x50   : > { %p816_p8 = scmp.ne.s32.totalorder %s1104_s1, %s815_s4  ;;  %s820_s22 = sshll.u32 %s951_s20, 4  ;;  %s821_s22 = int_to_ptr.vmem [resolvable:$false] %s820_s22 }
  0x51   : > { %s822_s21 = scalar_lea.vmem %s821_s22, 512  ;;  %p823_p6 = scmp.lt.s32.totalorder %s1104_s1, %s821_s22 }
  0x52   : > { %p818_p9 = pnand %p816_p8, %p1063_p1  ;;  %p824_p11 = scmp.lt.s32.totalorder %s822_s21, %s815_s4 }
  0x54   : > { %p819_p3 = pneg %p818_p9  ;;  %p825_p10 = por %p824_p11, %p823_p6 }
  0x56   : > { %p826_p12 = pnand %p825_p10, %p819_p3 }
  0x58   : > { %829 = shalt.err (!%p826_p12)
}
  0x59   : > { %s1274_s11 = smov 8   ;;  %s1275_s5 = smov 128  }
  0x5a   : > { %676 = dma.hbm_to_vmem [thread:$0]  (!%p1043_p13), %s1101_s8, 256, %s1104_s1, %s161_s9, %s1275_s5, %s1275_s5, %s1274_s11  }
  0x5b   : > { %s661_s29 = sshll.u32 %s942_s16, 5  ;;  %s208_s7 = scalar_lea.vmem [#allocation7], %s628_s6 }
  0x5c   : > { %s216_s4 = sshll.u32 %s208_s7, 4  ;;  %s214_s21 = scalar_lea.hbm %s1248_s2, %s661_s29  ;;  %s217_s4 = int_to_ptr.vmem [resolvable:$true] %s216_s4 }
  0x5d   : > { %s830_s0 = scalar_lea.hbm %s214_s21, 32  ;;  %s835_s26 = scalar_lea.hbm %s1248_s2, 192 }
  0x5e   : > { %p831_p11 = scmp.ne.s32.totalorder %s214_s21, %s830_s0  ;;  %p836_p2 = scmp.lt.u32.totalorder %s214_s21, %s1248_s2 }
  0x5f   : > { %p837_p4 = scmp.lt.u32.totalorder %s835_s26, %s830_s0  ;;  %p839_p8 = scmp.lt.u32.totalorder %s830_s0, %s214_s21 }
  0x60   : > { %p833_p7 = pnand %p831_p11, %p1063_p1 }
  0x61   : > { %p838_p5 = por %p837_p4, %p836_p2 }
  0x62   : > { %p834_p0 = pneg %p833_p7 }
  0x63   : > { %p840_p9 = por %p839_p8, %p838_p5 }
  0x65   : > { %p841_p3 = pnand %p840_p9, %p834_p0 }
  0x67   : > { %844 = shalt.err (!%p841_p3)
}
  0x68   : > { %s845_s27 = scalar_lea.vmem %s217_s4, 32  ;;  %s952_s8 = smov [#allocation7]  }
  0x69   : > { %p846_p6 = scmp.ne.s32.totalorder %s217_s4, %s845_s27  ;;  %s850_s6 = sshll.u32 %s952_s8, 4  ;;  %s851_s6 = int_to_ptr.vmem [resolvable:$false] %s850_s6 }
  0x6a   : > { %s852_s14 = scalar_lea.vmem %s851_s6, 64  ;;  %p853_p11 = scmp.lt.s32.totalorder %s217_s4, %s851_s6 }
  0x6b   : > { %p848_p10 = pnand %p846_p6, %p1063_p1  ;;  %p854_p7 = scmp.lt.s32.totalorder %s852_s14, %s845_s27 }
  0x6d   : > { %p849_p12 = pneg %p848_p10  ;;  %p855_p13 = por %p854_p7, %p853_p11 }
  0x6f   : > { %p856_p2 = pnand %p855_p13, %p849_p12 }
  0x71   : > { %859 = shalt.err (!%p856_p2)
}
  0x72   : > { %p1276_p4 = scmp.ne.s32.totalorder %s1269_s28, 0  ;;  %p1277_p0 = scmp.ne.s32.totalorder %s1272_s30, 0 }
  0x73   : > { %s1155_s0 = sand.u32 (!%p1277_p0), 1, %s930_s13   ;;  %p1278_p13 = scmp.ne.s32.totalorder (!%p1277_p0), %s1264_s23, 0 }
  0x74   : > { %682 = dma.hbm_to_vmem [thread:$0]  (!%p1276_p4), %s214_s21, 32, %s217_s4, %s1057_s10  }
  0x75   : > { %225 = sbr.rel (%p1277_p0) target bundleno = 397 (0x18d), region = 32  ;;  %s632_s12 = sshll.u32 (!%p1277_p0), %s1155_s0, 4 }
  0x76   : > { %s228_s25 = scalar_lea.sflag (!%p1277_p0), [#allocation3], %s1155_s0  ;;  %s231_s26 = scalar_lea.vmem (!%p1277_p0), [#allocation2], %s632_s12 }
  0x7c   : > { %913 = dma.done.wait (%p1278_p13), %s228_s25, 256  }
  0x7d   : > { %915 = vsyncadd (%p1278_p13), %s228_s25, 4294967040  ;;  %s236_s28 = sand.u32 1, %s1008_s18   ;;  %s633_s10 = sshll.u32 %s1155_s0, 7 }
  0x7e   : > { %s237_s19 = scalar_lea.sflag [#allocation6], %s236_s28  ;;  %s1167_s30 = scalar_lea.vmem [#allocation5], %s633_s10 }
  0x7f   : > { %917 = dma.done.wait (%p1278_p13), %s237_s19, 2080  }
  0x80   : > { %919 = vsyncadd (%p1278_p13), %s237_s19, 4294965216  ;;  %v953_v0 = vmov 0   ;;  %v742_v1 = vld [vmem:[%s1167_s30 + $0x4] ss:$8 sps:$4 sm:$0xff]   ;;  %v744_v2 = vld [vmem:[%s1167_s30] ss:$8 sps:$4 sm:$0xff]   ;;  %v443_v26 = vlaneseq }
  0x81   : > { %426 = vmatprep.mubr.bf16.mxu0 %v953_v0  ;;  %394 = vmatprep.subr.bf16.mxu0 %v742_v1  ;;  %v745_v3 = vld [vmem:[%s1167_s30 + $0x14] ss:$8 sps:$4 sm:$0xff]   ;;  %v747_v4 = vld [vmem:[%s1167_s30 + $0x10] ss:$8 sps:$4 sm:$0xff]   ;;  %v748_v5 = vld [vmem:[%s1167_s30 + $0x24] ss:$8 sps:$4 sm:$0xff]  }
  0x82   : > { %395 = vmatpush1.bf16.msra.mxu0 %v744_v2  ;;  %v750_v6 = vld [vmem:[%s1167_s30 + $0x20] ss:$8 sps:$4 sm:$0xff]   ;;  %v751_v7 = vld [vmem:[%s1167_s30 + $0x34] ss:$8 sps:$4 sm:$0xff]   ;;  %v753_v9 = vld [vmem:[%s1167_s30 + $0x30] ss:$8 sps:$4 sm:$0xff]  }
  0x83   : > { %396 = vmatprep.subr.bf16.mxu0 %v745_v3  ;;  %v285_v8 = vld [vmem:[%s231_s26] sm:$0xff]  ;;  %v286_v12 = vld [vmem:[%s231_s26 + $0x8] sm:$0xff]  ;;  %s634_s18 = sshll.u32 %s1155_s0, 1  ;;  %v444_v27 = vshrl.u32 %v443_v26, 7  ;;  %s281_s9 = scalar_lea.vmem [#allocation8], %s632_s12 }
  0x84   : > { %v287_v10 = vmul.f32 %v285_v8, %v285_v8  ;;  %v754_v11 = vld [vmem:[%s1167_s30 + $0x44] ss:$8 sps:$4 sm:$0xff]   ;;  %v288_v13 = vmul.f32 %v286_v12, %v286_v12  ;;  %v756_v14 = vld [vmem:[%s1167_s30 + $0x40] ss:$8 sps:$4 sm:$0xff]   ;;  %v757_v15 = vld [vmem:[%s1167_s30 + $0x54] ss:$8 sps:$4 sm:$0xff]   ;;  %v297_v21 = vpack.c.bf16 %v286_v12, %v285_v8 }
  0x85   : > { %v759_v16 = vld [vmem:[%s1167_s30 + $0x50] ss:$8 sps:$4 sm:$0xff]   ;;  %v760_v17 = vld [vmem:[%s1167_s30 + $0x64] ss:$8 sps:$4 sm:$0xff]   ;;  %v762_v18 = vld [vmem:[%s1167_s30 + $0x60] ss:$8 sps:$4 sm:$0xff]  }
  0x86   : > { %397 = vmatpush1.bf16.msra.mxu0 %v747_v4  ;;  %289 = vadd.xlane.f32.xlu0 %v287_v10  ;;  %v763_v19 = vld [vmem:[%s1167_s30 + $0x74] ss:$8 sps:$4 sm:$0xff]   ;;  %v765_v20 = vld [vmem:[%s1167_s30 + $0x70] ss:$8 sps:$4 sm:$0xff]   ;;  %v445_v28 = vsub.s32 0, %v444_v27  ;;  %s249_s23 = scalar_lea.vmem [#allocation7], %s634_s18 }
  0x87   : > { %398 = vmatprep.subr.bf16.mxu0 %v748_v5  ;;  %v441_v29 = vld [vmem:[%s249_s23] sm:$0x3]  ;;  %v449_v30 = vsub.s32 1, %v444_v27  ;;  %s488_s11 = sshll.u32 %s281_s9, 4  ;;  %s664_s5 = sshll.u32 %s938_s15, 8  ;;  %s1193_s11 = int_to_ptr.vmem [resolvable:$true] %s488_s11 }
  0x88   : > { %v446_v32 = vrot.slane %v441_v29, %v445_v28  ;;  %s1198_s4 = scalar_lea.hbm %s1249_s3, %s664_s5  ;;  %s472_s20 = scalar_lea.sflag [#allocation4], %s1155_s0 }
  0x89   : > { %v450_v35 = vrot.slane %v441_v29, %v449_v30  ;;  %s860_s22 = scalar_lea.vmem %s1193_s11, 256  ;;  %p1279_p5 = scmp.ne.s32.totalorder %s1265_s24, 0 }
  0x8a   : > { %399 = vmatpush1.bf16.msra.mxu0 %v750_v6  ;;  %291 = vadd.xlane.f32.xlu0 %v288_v13  ;;  %p861_p1 = scmp.ne.s32.totalorder %s1193_s11, %s860_s22  ;;  %s954_s15 = smov [#allocation8]  }
  0x8b   : > { %400 = vmatprep.subr.bf16.mxu0 %v751_v7  ;;  %s864_s21 = sshll.u32 %s954_s15, 4  ;;  %s865_s21 = int_to_ptr.vmem [resolvable:$false] %s864_s21 }
  0x8c   : > { %p862_p8 = pnand %p861_p1, %p1279_p5  ;;  %s866_s1 = scalar_lea.vmem %s865_s21, 512 }
  0x8d   : > { %p867_p3 = scmp.lt.s32.totalorder %s1193_s11, %s865_s21  ;;  %p868_p6 = scmp.lt.s32.totalorder %s866_s1, %s860_s22 }
  0x8e   : > { %401 = vmatpush1.bf16.msra.mxu0 %v753_v9  ;;  %p863_p9 = pneg %p862_p8 }
  0x8f   : > { %402 = vmatprep.subr.bf16.mxu0 %v754_v11  ;;  %p869_p10 = por %p868_p6, %p867_p3 }
  0x91   : > { %p870_p12 = pnand %p869_p10, %p863_p9 }
  0x92   : > { %403 = vmatpush1.bf16.msra.mxu0 %v756_v14 }
  0x93   : > { %404 = vmatprep.subr.bf16.mxu0 %v757_v15 }
  0x96   : > { %405 = vmatpush1.bf16.msra.mxu0 %v759_v16 }
  0x97   : > { %406 = vmatprep.subr.bf16.mxu0 %v760_v17 }
  0x9a   : > { %407 = vmatpush1.bf16.msra.mxu0 %v762_v18 }
  0x9b   : > { %408 = vmatprep.subr.bf16.mxu0 %v763_v19 }
  0x9e   : > { %409 = vmatpush1.bf16.msra.mxu0 %v765_v20 }
  0xa1   : > { %427 = vmatmul.mubr.bf16.vlgmr.msra.gmra.mrb[0].mxu0 %v297_v21 }
 0x113   : > { %v290_v22 = vpop.xlane.xlu0 %289 }
 0x114   : > { %v293_v24 = vmax.f32 %v290_v22, 1e-24 }
 0x116   : > { %766 = vrsqrt.f32 %v293_v24 }
 0x117   : > { %v292_v23 = vpop.xlane.xlu0 %291 }
 0x118   : > { %v294_v25 = vmax.f32 %v292_v23, 1e-24 }
 0x11a   : > { %768 = vrsqrt.f32 %v294_v25 }
 0x120   : > { %v767_v31 = vpop.eup %766 }
 0x124   : > { %v769_v33 = vpop.eup %768 }
 0x174   : > { %v428_v34 = vpop.f32.mrb[0].mxu0 }
 0x175   : > { %v437_v36 = vmul.f32 %v767_v31, %v428_v34  ;;  %v430_v37 = vpop.f32.mrb[1].mxu0 }
 0x176   : > { %v438_v38 = vmul.f32 %v767_v31, %v430_v37  ;;  %v432_v39 = vpop.f32.mrb[2].mxu0 }
 0x177   : > { %v453_v40 = vadd.f32 %v446_v32, %v437_v36  ;;  %v439_v41 = vmul.f32 %v769_v33, %v432_v39  ;;  %v434_v42 = vpop.f32.mrb[3].mxu0 }
 0x178   : > { %v454_v43 = vadd.f32 %v450_v35, %v438_v38  ;;  %v440_v44 = vmul.f32 %v769_v33, %v434_v42 }
 0x179   : > { %v455_v45 = vadd.f32 %v446_v32, %v439_v41 }
 0x17a   : > { %v662_v46 = vpack.c.bf16 %v454_v43, %v453_v40  ;;  %v456_v47 = vadd.f32 %v450_v35, %v440_v44 }
 0x17c   : > { %469 = vst [vmem:[%s281_s9] sm:$0xff] %v662_v46  ;;  %v663_v48 = vpack.c.bf16 %v456_v47, %v455_v45 }
 0x17e   : > { %470 = vst [vmem:[%s281_s9 + $0x8] sm:$0xff] %v663_v48 }
 0x17f   : > { %873 = shalt.err (!%p870_p12)
}
 0x180   : > { %s874_s27 = scalar_lea.hbm %s1198_s4, 256  ;;  %s878_s14 = scalar_lea.hbm %s1249_s3, 1536 }
 0x181   : > { %p875_p11 = scmp.ne.s32.totalorder %s1198_s4, %s874_s27  ;;  %p879_p4 = scmp.lt.u32.totalorder %s1198_s4, %s1249_s3 }
 0x182   : > { %p880_p0 = scmp.lt.u32.totalorder %s878_s14, %s874_s27  ;;  %p882_p1 = scmp.lt.u32.totalorder %s874_s27, %s1198_s4 }
 0x183   : > { %p876_p7 = pnand %p875_p11, %p1279_p5 }
 0x184   : > { %p881_p13 = por %p880_p0, %p879_p4 }
 0x185   : > { %p877_p2 = pneg %p876_p7 }
 0x186   : > { %p883_p8 = por %p882_p1, %p881_p13 }
 0x188   : > { %p884_p9 = pnand %p883_p8, %p877_p2 }
 0x18a   : > { %887 = shalt.err (!%p884_p9)
}
 0x18b   : > { %s955_s26 = smov 128   ;;  %s956_s28 = smov 8  }
 0x18c   : > { %671 = dma.vmem_to_hbm [thread:$0]  (%p1279_p5), %s1193_s11, 256, %s1198_s4, %s472_s20, %s955_s26, %s955_s26, %s956_s28  }
 0x18d PF: > { %s1280_s10 = sld [smem:[#allocation12_spill]]  ;;  %s1281_s19 = sld [smem:[#allocation16_spill]] }
 0x18e   : > { %p688_p3 = scmp.ge.s32.totalorder %s946_s17, 2 }
 0x193   : > { %s503_s30 = sand.u32 1, %s1280_s10   ;;  %p1282_p6 = scmp.ne.s32.totalorder %s1281_s19, 0 }
 0x194   : > { %s504_s18 = scalar_lea.sflag [#allocation4], %s503_s30 }
 0x195   : > { %p684_p10 = pnand %p688_p3, %p1282_p6 }
 0x197   : > { %921 = dma.done.wait (!%p684_p10), %s504_s18, 256  }
 0x198   : > { %923 = vsyncadd (!%p684_p10), %s504_s18, 4294967040  ;;  %s22_s17 = sadd.s32 1, %s946_s17   ;;  %s1283_s23 = sld [smem:[#allocation13_spill]] }
 0x199   : > { %p19_p12 = scmp.ge.s32.totalorder %s22_s17, 8   ;;  %s1284_s14 = sld [smem:[#allocation15_spill]] }
 0x19a   : > { %s1285_s24 = sld [smem:[#allocation14_spill]]  ;;  %s1286_s12 = smov %s930_s13 }
 0x19b   : > { %s1288_s15 = smov %s942_s16  ;;  %21 = sbr.rel (!%p19_p12) target bundleno = 11 (0xb), region = 101 }
 0x19e   : > { %s1287_s13 = smov %s1283_s23 }
 0x1a0   : > { %s1289_s16 = smov %s1285_s24 }
 0x1a2   :  { %509 = vsyncpa [#allocation3], 1 }
 0x1a3   :  { %511 = vsyncpa [#allocation3 + $0x1], 1 }
 0x1a4   :  { %512 = vsyncpa [#allocation6], 1 }
 0x1a5   :  { %514 = vsyncpa [#allocation6 + $0x1], 1 }
 0x1a6   :  { %515 = vsyncpa [#allocation4], 1 }
 0x1a7   :  { %517 = vsyncpa [#allocation4 + $0x1], 1 }

</bundles_post_ra>
